<compile_context>
chip_gen: v5e
topology: v5e:2x2
jax: 0.10.0
libtpu: 0.0.40
codegen_flags: <defaults>
</compile_context>

<pallas_src>
import jax
import jax.numpy as jnp
from jax.experimental import pallas as pl
from jax.experimental.pallas import tpu as pltpu


def _round_up(v: int, m: int) -> int:
    return (v + m - 1) // m * m


def _pick_row_tile(m: int) -> int:
    """Largest 16-aligned row tile (<= 256) dividing m (m is a multiple of 8)."""
    for t in (256, 128, 64, 32, 16, 8):
        if m % t == 0:
            return t
    return m


# ---------------------------------------------------------------------------
# Kernels
# ---------------------------------------------------------------------------
def _mm_resident_kernel(a_ref, b_ref, o_ref):
    """One row tile of O = A @ B with the whole B resident in VMEM (no K axis)."""
    o_ref[...] = jnp.dot(
        a_ref[...], b_ref[...], preferred_element_type=jnp.float32
    ).astype(o_ref.dtype)


def _mm_streamk_kernel(a_ref, b_ref, o_ref, acc_ref):
    """(row tile i, K slab k) step of O = A @ B with an f32 VMEM accumulator."""
    k = pl.program_id(1)

    @pl.when(k == 0)
    def _():
        acc_ref[...] = jnp.zeros_like(acc_ref)

    acc_ref[...] += jnp.dot(
        a_ref[...], b_ref[...], preferred_element_type=jnp.float32
    )

    @pl.when(k == pl.num_programs(1) - 1)
    def _():
        o_ref[...] = acc_ref[...].astype(o_ref.dtype)


# ---------------------------------------------------------------------------
# Tiled matmul wrapper (operands already lane/sublane padded)
# ---------------------------------------------------------------------------
def _matmul_padded(a, b, *, out_dtype=jnp.float32):
    """O = a @ b.  a: (M, K) bf16, M % 8 == 0, K % 128 == 0; b: (K, N), N % 128 == 0."""
    M, K = a.shape
    Kb, N = b.shape
    assert K == Kb, "inner dimensions must match"
    assert M % 8 == 0 and K % 128 == 0 and N % 128 == 0, "operands must be pre-padded"

    tile_m = _pick_row_tile(M)
    elt = jnp.dtype(a.dtype).itemsize
    out_elt = jnp.dtype(out_dtype).itemsize

    flops = 2 * M * K * N
    bytes_accessed = elt * (M * K + K * N) + out_elt * M * N

    # VMEM footprint with default double buffering (no scratch on this path).
    resident_bytes = (
        2 * (tile_m * K * elt) + 2 * (K * N * elt) + 2 * (tile_m * N * out_elt)
    )

    if resident_bytes <= 24 * 1024 * 1024:
        # B fits: keep it VMEM-resident (index_map always (0,0), fetched once)
        # and drop the K grid axis entirely — one MXU dot per row tile.
        return pl.pallas_call(
            _mm_resident_kernel,
            out_shape=jax.ShapeDtypeStruct((M, N), out_dtype),
            grid_spec=pltpu.PrefetchScalarGridSpec(
                num_scalar_prefetch=0,
                grid=(M // tile_m,),
                in_specs=[
                    pl.BlockSpec((tile_m, K), lambda i: (i, 0)),
                    pl.BlockSpec((K, N), lambda i: (0, 0)),  # resident RHS
                ],
                out_specs=pl.BlockSpec((tile_m, N), lambda i: (i, 0)),
            ),
            compiler_params=pltpu.CompilerParams(
                dimension_semantics=("parallel",),
            ),
            cost_estimate=pl.CostEstimate(
                flops=flops, transcendentals=0, bytes_accessed=bytes_accessed
            ),
        )(a, b)

    # Large-shape fallback: stream K slabs, accumulate in f32 VMEM scratch.
    tile_k = next(t for t in (512, 256, 128) if K % t == 0)
    return pl.pallas_call(
        _mm_streamk_kernel,
        out_shape=jax.ShapeDtypeStruct((M, N), out_dtype),
        grid_spec=pltpu.PrefetchScalarGridSpec(
            num_scalar_prefetch=0,
            grid=(M // tile_m, K // tile_k),
            in_specs=[
                pl.BlockSpec((tile_m, tile_k), lambda i, k: (i, k)),
                pl.BlockSpec((tile_k, N), lambda i, k: (k, 0)),
            ],
            out_specs=pl.BlockSpec((tile_m, N), lambda i, k: (i, 0)),
            scratch_shapes=[pltpu.VMEM((tile_m, N), jnp.float32)],
        ),
        compiler_params=pltpu.CompilerParams(
            dimension_semantics=("parallel", "arbitrary"),
            # 48 MiB leaves headroom on v7x (64 MiB physical VMEM per TC).
            vmem_limit_bytes=48 * 1024 * 1024,
        ),
        cost_estimate=pl.CostEstimate(
            flops=flops, transcendentals=0, bytes_accessed=bytes_accessed
        ),
    )(a, b)


# ---------------------------------------------------------------------------
# GraphConvolution forward
# ---------------------------------------------------------------------------
def fold_params(weight, adjacency):
    """Pad parameters and fold B = weight @ adjacency (call once per weight update)."""
    IN, OUT = weight.shape
    assert adjacency.shape == (OUT, OUT), "adjacency must be [out_features, out_features]"
    IN_P = _round_up(IN, 128)
    OUT_P = _round_up(OUT, 128)
    bf16 = jnp.bfloat16
    w_p = jnp.pad(weight.astype(bf16), ((0, IN_P - IN), (0, OUT_P - OUT)))
    a_p = jnp.pad(adjacency.astype(bf16), ((0, OUT_P - OUT), (0, OUT_P - OUT)))
    # (x @ W) @ A == x @ (W @ A); zero row/col padding is preserved by the matmul.
    return _matmul_padded(w_p, a_p, out_dtype=bf16)  # (IN_P, OUT_P) bf16, padded


def gcn_forward(x, weight, adjacency, *, folded_b=None):
    """output = (x @ weight) @ adjacency, computed as x @ (weight @ adjacency)."""
    N_rows, IN = x.shape
    IN_w, OUT = weight.shape
    assert IN == IN_w, "weight shape mismatch"

    if folded_b is None:
        folded_b = fold_params(weight, adjacency)
    IN_P, OUT_P = folded_b.shape

    # Rows padded to a multiple of 16 (bf16 sublane packing), features to IN_P lanes.
    M_P = _round_up(N_rows, 16)
    x_p = jnp.pad(x.astype(jnp.bfloat16), ((0, M_P - N_rows), (0, IN_P - IN)))

    out_p = _matmul_padded(x_p, folded_b, out_dtype=jnp.float32)
    return out_p[:N_rows, :OUT]


if __name__ == "__main__":
    key = jax.random.PRNGKey(0)
    kx, kw, ka = jax.random.split(key, 3)

    # Small shapes consistent with the module: x is [num_labels, in_features],
    # weight is [in_features, label_cnt], adjacency is [label_cnt, label_cnt].
    label_cnt = 20
    in_features = 48
    num_nodes = 20  # ML-GCN: one graph node per label

    x = jax.random.normal(kx, (num_nodes, in_features), jnp.float32)
    weight = 0.1 * jax.random.normal(kw, (in_features, label_cnt), jnp.float32)

    # Adjacency built in-script analogously to gen_A (threshold, column-normalize,
    # add identity).  TODO(synk): the pickle-file load of gen_A is not reproduced.
    adj_raw = jax.random.uniform(ka, (label_cnt, label_cnt), jnp.float32)
    adj = jnp.where(adj_raw < 0.2, 0.0, 1.0)
    adj = adj * 0.25 / (adj.sum(0, keepdims=True) + 1e-6)
    adj = adj + jnp.eye(label_cnt, dtype=jnp.float32)

    # Parameters padded + folded once (hoisted out of the per-call path).
    b_folded = fold_params(weight, adj)
    out = gcn_forward(x, weight, adj, folded_b=b_folded)
    out = jax.block_until_ready(out)

    # Reference check (loose tolerance: bf16 MXU inputs vs. f32 reference).
    ref = (x @ weight) @ adj
    assert out.shape == ref.shape
    assert jnp.allclose(out, ref, rtol=5e-2, atol=5e-2), (
        f"max abs err {float(jnp.max(jnp.abs(out - ref)))}"
    )

    print("KERNEL_OK")
</pallas_src>

<mosaic_0001>
module attributes {stable_mosaic.version = 11 : i64} {
  func.func @_mm_resident_kernel(%arg0: i32, %arg1: memref<128x128xbf16, #tpu.memory_space<vmem>>, %arg2: memref<128x128xbf16, #tpu.memory_space<vmem>>, %arg3: memref<128x128xbf16, #tpu.memory_space<vmem>>) attributes {dimension_semantics = [#tpu.dimension_semantics<parallel>], iteration_bounds = array<i64: 1>, scalar_prefetch = 0 : i64, scratch_operands = 0 : i64, tpu.core_type = #tpu.core_type<tc>, window_params = [{transform_indices = @transform_0, window_bounds = array<i64: 128, 128>}, {pipeline_mode = #tpu.pipeline_mode<synchronous>, transform_indices = @transform_1, window_bounds = array<i64: 128, 128>}, {transform_indices = @transform_2, window_bounds = array<i64: 128, 128>}]} {
    %c0 = arith.constant 0 : index
    %c0_0 = arith.constant 0 : index
    %0 = vector.load %arg1[%c0, %c0_0] : memref<128x128xbf16, #tpu.memory_space<vmem>>, vector<128x128xbf16>
    %c0_1 = arith.constant 0 : index
    %c0_2 = arith.constant 0 : index
    %1 = vector.load %arg2[%c0_1, %c0_2] : memref<128x128xbf16, #tpu.memory_space<vmem>>, vector<128x128xbf16>
    %cst = arith.constant dense<0.000000e+00> : vector<128x128xf32>
    %2 = tpu.matmul %0, %1, %cst {dimension_numbers = #tpu.dot_dimension_numbers<[1], [0], [0], [1], [0, 0, 1, 1], [], []>} : vector<128x128xbf16>, vector<128x128xbf16>, vector<128x128xf32> -> vector<128x128xf32>
    %3 = arith.truncf %2 : vector<128x128xf32> to vector<128x128xbf16>
    %c0_3 = arith.constant 0 : index
    %c0_4 = arith.constant 0 : index
    %4 = vector.load %arg3[%c0_3, %c0_4] : memref<128x128xbf16, #tpu.memory_space<vmem>>, vector<128x128xbf16>
    tpu.vector_store %arg3[%c0_3, %c0_4], %3 {strides = array<i32>} : memref<128x128xbf16, #tpu.memory_space<vmem>>, vector<128x128xbf16>,
    return
  }
  func.func @transform_0(%arg0: i32) -> (i32, i32) {
    %c0_i32 = arith.constant 0 : i32
    %c0_i32_0 = arith.constant 0 : i32
    return %arg0, %c0_i32 : i32, i32
  }
  func.func @transform_1(%arg0: i32) -> (i32, i32) {
    %c0_i32 = arith.constant 0 : i32
    %c0_i32_0 = arith.constant 0 : i32
    %c0_i32_1 = arith.constant 0 : i32
    return %c0_i32, %c0_i32_0 : i32, i32
  }
  func.func @transform_2(%arg0: i32) -> (i32, i32) {
    %c0_i32 = arith.constant 0 : i32
    %c0_i32_0 = arith.constant 0 : i32
    return %arg0, %c0_i32 : i32, i32
  }
}

</mosaic_0001>

<bundles_post_ra>
// kernel: tpu_custom_call.1
= control target key start
LH: loop header
LB: loop body
LE: loop exit
PB: predicated region body
PF: predicated region fallthrough
CT: control target
= control target key end

     0   :  { %7 = vsyncpa [#allocation3], 0  ;;  %s545_s0 = inlined_call_operand.hbm [shape: bf16[128,128], index: 0, kind: input, shape index: {}]   ;;  %s546_s1 = inlined_call_operand.hbm [shape: bf16[128,128], index: 1, kind: input, shape index: {}]   ;;  %s547_s2 = inlined_call_operand.hbm [shape: bf16[128,128], index: 2, kind: output, shape index: {}]  }
   0x1   :  { %8 = vsyncpa [#allocation6], 0 }
   0x2   :  { %9 = vsyncpa [#allocation4], 0  ;;  %s14_s11 = sshll.u32 %s545_s0, 4  ;;  %s507_s12 = smov [#allocation2]   ;;  %s15_s11 = int_to_ptr.hbm [resolvable:$true] %s14_s11 }
   0x3   :  { %s16_s13 = sshll.u32 %s507_s12, 4  ;;  %s27_s16 = sshll.u32 %s546_s1, 4  ;;  %s17_s13 = int_to_ptr.vmem [resolvable:$true] %s16_s13  ;;  %s28_s16 = int_to_ptr.hbm [resolvable:$true] %s27_s16 }
   0x4   :  { %s508_s17 = smov 64   ;;  %s509_s18 = smov 4  }
   0x5   :  { %22 = dma.hbm_to_vmem [thread:$0]  %s15_s11, 1024, %s17_s13, [#allocation3], %s508_s17, %s508_s17, %s509_s18  }
   0x6   :  { %s510_s19 = smov [#allocation5]  }
   0x7   :  { %s29_s20 = sshll.u32 %s510_s19, 4  ;;  %s30_s20 = int_to_ptr.vmem [resolvable:$true] %s29_s20 }
   0x8   :  { %35 = dma.hbm_to_vmem [thread:$0]  %s28_s16, 1024, %s30_s20, [#allocation6], %s508_s17, %s508_s17, %s509_s18  }
   0x9   :  { %501 = dma.done.wait [#allocation3], 1024  }
   0xa   :  { %502 = vsyncadd [#allocation3], 4294966272 }
   0xb   :  { %503 = dma.done.wait [#allocation6], 1024  }
   0xc   :  { %504 = vsyncadd [#allocation6], 4294966272  ;;  %v352_v0 = vld [vmem:[#allocation5 + $0x38] sm:$0xff]  ;;  %v351_v1 = vld [vmem:[#allocation5 + $0x30] sm:$0xff]  ;;  %s511_s0 = smov [#allocation7]   ;;  %s259_s23 = sshll.u32 %s547_s2, 4  ;;  %s260_s23 = int_to_ptr.hbm [resolvable:$true] %s259_s23 }
   0xd   :  { %172 = vmatpush.bf16.msra.mxu0 %v352_v0  ;;  %400 = vmatpush.bf16.msra.mxu1 %v352_v0  ;;  %v350_v2 = vld [vmem:[#allocation5 + $0x28] sm:$0xff]  ;;  %v349_v3 = vld [vmem:[#allocation5 + $0x20] sm:$0xff]  ;;  %v348_v4 = vld [vmem:[#allocation5 + $0x18] sm:$0xff]  ;;  %s257_s1 = sshll.u32 %s511_s0, 4  ;;  %s258_s1 = int_to_ptr.vmem [resolvable:$true] %s257_s1 }
   0xe   :  { %401 = vmatpush.bf16.msra.mxu2 %v352_v0  ;;  %402 = vmatpush.bf16.msra.mxu3 %v352_v0  ;;  %v347_v5 = vld [vmem:[#allocation5 + $0x10] sm:$0xff]  ;;  %v346_v6 = vld [vmem:[#allocation5 + $0x8] sm:$0xff]  ;;  %v345_v7 = vld [vmem:[#allocation5] sm:$0xff] }
   0xf   :  { %v337_v8 = vld [vmem:[#allocation2] sm:$0xff]  ;;  %v339_v9 = vld [vmem:[#allocation2 + $0x10] sm:$0xff]  ;;  %v338_v12 = vld [vmem:[#allocation2 + $0x8] sm:$0xff] }
  0x10   :  { %v341_v10 = vld [vmem:[#allocation2 + $0x20] sm:$0xff]  ;;  %v343_v11 = vld [vmem:[#allocation2 + $0x30] sm:$0xff]  ;;  %v340_v13 = vld [vmem:[#allocation2 + $0x18] sm:$0xff] }
  0x11   :  { %173 = vmatpush.bf16.msra.mxu0 %v351_v1  ;;  %403 = vmatpush.bf16.msra.mxu1 %v351_v1  ;;  %v342_v14 = vld [vmem:[#allocation2 + $0x28] sm:$0xff]  ;;  %v344_v15 = vld [vmem:[#allocation2 + $0x38] sm:$0xff] }
  0x12   :  { %404 = vmatpush.bf16.msra.mxu2 %v351_v1  ;;  %405 = vmatpush.bf16.msra.mxu3 %v351_v1 }
  0x15   :  { %174 = vmatpush.bf16.msra.mxu0 %v350_v2  ;;  %406 = vmatpush.bf16.msra.mxu1 %v350_v2 }
  0x16   :  { %407 = vmatpush.bf16.msra.mxu2 %v350_v2  ;;  %408 = vmatpush.bf16.msra.mxu3 %v350_v2 }
  0x19   :  { %175 = vmatpush.bf16.msra.mxu0 %v349_v3  ;;  %409 = vmatpush.bf16.msra.mxu1 %v349_v3 }
  0x1a   :  { %410 = vmatpush.bf16.msra.mxu2 %v349_v3  ;;  %411 = vmatpush.bf16.msra.mxu3 %v349_v3 }
  0x1d   :  { %176 = vmatpush.bf16.msra.mxu0 %v348_v4  ;;  %412 = vmatpush.bf16.msra.mxu1 %v348_v4 }
  0x1e   :  { %413 = vmatpush.bf16.msra.mxu2 %v348_v4  ;;  %414 = vmatpush.bf16.msra.mxu3 %v348_v4 }
  0x21   :  { %177 = vmatpush.bf16.msra.mxu0 %v347_v5  ;;  %415 = vmatpush.bf16.msra.mxu1 %v347_v5 }
  0x22   :  { %416 = vmatpush.bf16.msra.mxu2 %v347_v5  ;;  %417 = vmatpush.bf16.msra.mxu3 %v347_v5 }
  0x25   :  { %178 = vmatpush.bf16.msra.mxu0 %v346_v6  ;;  %418 = vmatpush.bf16.msra.mxu1 %v346_v6 }
  0x26   :  { %419 = vmatpush.bf16.msra.mxu2 %v346_v6  ;;  %420 = vmatpush.bf16.msra.mxu3 %v346_v6 }
  0x29   :  { %179 = vmatpush.bf16.msra.mxu0 %v345_v7  ;;  %421 = vmatpush.bf16.msra.mxu1 %v345_v7 }
  0x2a   :  { %422 = vmatpush.bf16.msra.mxu2 %v345_v7  ;;  %423 = vmatpush.bf16.msra.mxu3 %v345_v7 }
  0x2c   :  { %180 = vmatmul.bf16.vlgmr.msra.gmra.mxu0 %v337_v8  ;;  %190 = vmatmul.bf16.vlgmr.msra.gmra.mxu1 %v339_v9 }
  0x2d   :  { %200 = vmatmul.bf16.vlgmr.msra.gmra.mxu2 %v341_v10  ;;  %210 = vmatmul.bf16.vlgmr.msra.gmra.mxu3 %v343_v11 }
  0x3c   :  { %185 = vmatmul.bf16.gmra.mxu0 %v338_v12  ;;  %195 = vmatmul.bf16.gmra.mxu1 %v340_v13 }
  0x3d   :  { %205 = vmatmul.bf16.gmra.mxu2 %v342_v14  ;;  %215 = vmatmul.bf16.gmra.mxu3 %v344_v15 }
  0xa9   :  { %v181_v16 = vpop.f32.mrf.mxu0  ;;  %v191_v17 = vpop.f32.mrf.mxu1 }
  0xb0   :  { %v201_v18 = vpop.f32.mrf.mxu2  ;;  %v211_v19 = vpop.f32.mrf.mxu3 }
  0xb1   :  { %v183_v20 = vpop.f32.mrf.mxu0  ;;  %v193_v21 = vpop.f32.mrf.mxu1 }
  0xb2   :  { %v356_v22 = vpack.c.bf16 %v183_v20, %v181_v16  ;;  %v366_v23 = vpack.c.bf16 %v193_v21, %v191_v17 }
  0xb4   :  { %357 = vst [vmem:[#allocation7] sm:$0xff] %v356_v22  }
  0xb5   :  { %394 = vst [vmem:[#allocation7 + $0x10] sm:$0xff] %v366_v23  }
  0xb8   :  { %v203_v24 = vpop.f32.mrf.mxu2  ;;  %v213_v25 = vpop.f32.mrf.mxu3 }
  0xb9   :  { %v376_v26 = vpack.c.bf16 %v203_v24, %v201_v18  ;;  %v386_v27 = vpack.c.bf16 %v213_v25, %v211_v19  ;;  %v186_v28 = vpop.f32.mrf.mxu0  ;;  %v196_v29 = vpop.f32.mrf.mxu1 }
  0xbb   :  { %396 = vst [vmem:[#allocation7 + $0x20] sm:$0xff] %v376_v26  }
  0xbc   :  { %398 = vst [vmem:[#allocation7 + $0x30] sm:$0xff] %v386_v27  }
  0xc0   :  { %v206_v30 = vpop.f32.mrf.mxu2  ;;  %v216_v31 = vpop.f32.mrf.mxu3 }
  0xc1   :  { %v188_v32 = vpop.f32.mrf.mxu0  ;;  %v198_v33 = vpop.f32.mrf.mxu1 }
  0xc2   :  { %v361_v34 = vpack.c.bf16 %v188_v32, %v186_v28  ;;  %v371_v35 = vpack.c.bf16 %v198_v33, %v196_v29 }
  0xc4   :  { %393 = vst [vmem:[#allocation7 + $0x8] sm:$0xff] %v361_v34  }
  0xc5   :  { %395 = vst [vmem:[#allocation7 + $0x18] sm:$0xff] %v371_v35  }
  0xc8   :  { %v208_v36 = vpop.f32.mrf.mxu2  ;;  %v218_v37 = vpop.f32.mrf.mxu3 }
  0xc9   :  { %v381_v38 = vpack.c.bf16 %v208_v36, %v206_v30  ;;  %v391_v39 = vpack.c.bf16 %v218_v37, %v216_v31 }
  0xcb   :  { %397 = vst [vmem:[#allocation7 + $0x28] sm:$0xff] %v381_v38  }
  0xcc   :  { %399 = vst [vmem:[#allocation7 + $0x38] sm:$0xff] %v391_v39  }
  0xcd   :  { %265 = dma.vmem_to_hbm [thread:$0]  %s258_s1, 1024, %s260_s23, [#allocation4], %s508_s17, %s508_s17, %s509_s18  }
  0xce   :  { %505 = dma.done.wait [#allocation4], 1024  }
  0xcf   :  { %506 = vsyncadd [#allocation4], 4294966272 }
  0xd0   :  { %270 = vsyncpa [#allocation3], 1 }
  0xd1   :  { %271 = vsyncpa [#allocation6], 1 }
  0xd2   :  { %272 = vsyncpa [#allocation4], 1 }

</bundles_post_ra>
